<compile_context>
chip_gen: v5e
topology: v5e:2x2
jax: 0.10.0
libtpu: 0.0.40
codegen_flags: <defaults>
</compile_context>

<pallas_src>
import functools

import jax
import jax.numpy as jnp
from jax import lax
from jax.experimental import pallas as pl
from jax.experimental.pallas import tpu as pltpu

BN_EPS = 1e-5


def _cdiv(a, b):
    return -(-a // b)


def _round_up(n, m):
    return ((n + m - 1) // m) * m


# --------------------------------------------------------------------------
# Kernel
# --------------------------------------------------------------------------
def mlp_kernel(x_ref, w1_ref, b1_ref, w2_ref, b2_ref, w3r_ref, o_ref):
    # ---- Layer 1: Linear -> ReLU        (Dropout = identity in eval mode)
    h = jnp.dot(x_ref[...], w1_ref[...], preferred_element_type=jnp.float32)
    h = jnp.maximum(h + b1_ref[...], 0.0)

    # ---- Layer 2: Linear (BN1 folded into W2/b2) -> ReLU
    h = jnp.dot(h.astype(w2_ref.dtype), w2_ref[...],
                preferred_element_type=jnp.float32)
    h = jnp.maximum(h + b2_ref[...], 0.0)

    # ---- Head: Linear(H, 1) (BN2 folded) as [1,H] x [tb,H]^T on the MXU,
    # producing a lane-dense [1, tb] row (b3 is added in the wrapper).
    out_row = lax.dot_general(
        w3r_ref[...], h.astype(w3r_ref.dtype),
        dimension_numbers=(((1,), (1,)), ((), ())),
        preferred_element_type=jnp.float32)
    o_ref[...] = out_row[None].astype(o_ref.dtype)          # (1, 1, tb) block


# --------------------------------------------------------------------------
# Host-side helpers
# --------------------------------------------------------------------------
def _fold_bn_into_next_linear(gamma, beta, rm, rv, w_next, b_next):
    """Fold eval-mode BatchNorm1d (applied before w_next) into w_next/b_next.

    BN(h) = h * s + t with s = gamma * rsqrt(rv + eps), t = beta - rm * s.
    Then BN(h) @ W + b = h @ (diag(s) @ W) + (t @ W + b).
    """
    s = gamma * lax.rsqrt(rv + BN_EPS)          # [1, H]
    t = beta - rm * s                           # [1, H]
    w_folded = s.reshape(-1, 1) * w_next        # [H, out]
    b_folded = b_next + t @ w_next              # [1, out]
    return w_folded, b_folded


def _choose_batch_tile(B, block_b):
    """Pick (tb, n_tiles): tb multiple of 8, <= block_b.

    Prefers >= 2 tiles so the 'parallel' batch axis can shard across both
    TensorCores on v7x.  tb adapts to B, so a ragged final tile costs only a
    few wasted compute rows (< tb) and never an extra padded HBM copy of x.
    """
    assert block_b > 0 and block_b % 8 == 0
    if B <= 8:
        return B, 1                              # single full-extent block
    b8 = _round_up(B, 8)
    min_tiles = 2 if b8 >= 16 else 1
    n_tiles = max(_cdiv(b8, block_b), min_tiles)
    tb = min(_round_up(_cdiv(b8, n_tiles), 8), block_b)
    return tb, _cdiv(B, tb)


def _pick_vmem_limit(need_bytes):
    try:
        phys = pltpu.get_tpu_info().vmem_capacity_bytes
    except Exception:                            # conservative: v7x = 64 MiB/TC
        phys = 64 * 1024 * 1024
    want = max(32 * 1024 * 1024, 2 * need_bytes)
    return int(min(phys - 8 * 1024 * 1024, want))


# --------------------------------------------------------------------------
# Wrapper
# --------------------------------------------------------------------------
@functools.partial(jax.jit, static_argnames=("block_b", "compute_dtype"))
def mlp_classifier_forward(x, params, *, block_b=2048,
                           compute_dtype=jnp.bfloat16):
    """x: [B, D]. Returns [B] float32 (matches `net(x).squeeze(1)` in eval)."""
    B, D = x.shape
    H = params["w1"].shape[1]

    # Fold BN (eval mode) into the following Linear in f32, then cast.
    w2f, b2f = _fold_bn_into_next_linear(
        params["g1"], params["be1"], params["rm1"], params["rv1"],
        params["w2"], params["b2"])
    w3f, b3f = _fold_bn_into_next_linear(
        params["g2"], params["be2"], params["rm2"], params["rv2"],
        params["w3"], params["b3"])

    w1 = params["w1"].astype(compute_dtype)
    b1 = params["b1"].astype(jnp.float32)
    w2f = w2f.astype(compute_dtype)
    b2f = b2f.astype(jnp.float32)
    w3r = w3f.reshape(1, H).astype(compute_dtype)   # [1, H] row for the head
    # TODO(synk): accept bf16 x from the caller to skip this extra cast pass.
    x = x.astype(compute_dtype)

    tb, n_tiles = _choose_batch_tile(B, block_b)

    # VMEM budget: double-buffered x/out blocks + resident weights + activations.
    isz = jnp.dtype(compute_dtype).itemsize
    w_bytes = (D * H + H * H + H) * isz + 2 * H * 4
    x_blk = tb * D * isz
    o_blk = 8 * tb * 4                               # (1, tb) row, 8-sublane pad
    h_tmp = 2 * tb * H * 4                           # intermediate activations
    need = 2 * (x_blk + o_blk) + 2 * w_bytes + h_tmp
    vmem_limit = _pick_vmem_limit(need)
    if need > vmem_limit:
        # TODO(synk): add a K/N-tiled fallback for very large hidden_dim.
        raise ValueError(
            f"Estimated VMEM footprint {need / 2**20:.1f} MiB exceeds the "
            f"{vmem_limit / 2**20:.1f} MiB budget; reduce hidden_dim or "
            "block_b (K/N weight tiling not implemented).")

    const = lambda shape: pl.BlockSpec(shape, lambda i: (0,) * len(shape))

    cost = pl.CostEstimate(
        flops=2 * B * (D * H + H * H + H),
        transcendentals=0,
        bytes_accessed=(B * D * isz + B * 4
                        + (D * H + H * H + H) * isz + 2 * H * 4),
    )

    out = pl.pallas_call(
        mlp_kernel,
        out_shape=jax.ShapeDtypeStruct((n_tiles, 1, tb), jnp.float32),
        grid=(n_tiles,),
        in_specs=[
            pl.BlockSpec((tb, D), lambda i: (i, 0)),   # x: streamed per tile
            const((D, H)),                             # w1        (VMEM-resident)
            const((1, H)),                             # b1
            const((H, H)),                             # w2 (BN1 folded)
            const((1, H)),                             # b2 (BN1 folded)
            const((1, H)),                             # w3 row (BN2 folded)
        ],
        out_specs=pl.BlockSpec((1, 1, tb), lambda i: (i, 0, 0)),
        compiler_params=pltpu.CompilerParams(
            dimension_semantics=("parallel",),
            vmem_limit_bytes=vmem_limit,
        ),
        cost_estimate=cost,
    )(x, w1, b1, w2f, b2f, w3r)

    # Flatten the lane-dense tiles, drop ragged-tile garbage rows, add b3.
    return out.reshape(-1)[:B] + b3f[0, 0]


# --------------------------------------------------------------------------
# Params + references
# --------------------------------------------------------------------------
def init_params(key, input_dim, hidden_dim):
    """Deterministic parameter init (shapes match the PyTorch module)."""
    ks = jax.random.split(key, 8)

    def lin(kw, kb, fan_in, fan_out):
        bound = 1.0 / jnp.sqrt(fan_in)
        w = jax.random.uniform(kw, (fan_in, fan_out), jnp.float32, -bound, bound)
        b = jax.random.uniform(kb, (1, fan_out), jnp.float32, -bound, bound)
        return w, b

    w1, b1 = lin(ks[0], ks[1], input_dim, hidden_dim)
    w2, b2 = lin(ks[2], ks[3], hidden_dim, hidden_dim)
    w3, b3 = lin(ks[4], ks[5], hidden_dim, 1)

    # BatchNorm1d: affine weight/bias and running mean/var (eval mode).
    g1 = jnp.ones((1, hidden_dim), jnp.float32)
    be1 = jnp.zeros((1, hidden_dim), jnp.float32)
    rm1 = 0.1 * jax.random.normal(ks[6], (1, hidden_dim), jnp.float32)
    rv1 = jnp.ones((1, hidden_dim), jnp.float32) + 0.05

    g2 = jnp.ones((1, hidden_dim), jnp.float32)
    be2 = jnp.zeros((1, hidden_dim), jnp.float32)
    rm2 = 0.1 * jax.random.normal(ks[7], (1, hidden_dim), jnp.float32)
    rv2 = jnp.ones((1, hidden_dim), jnp.float32) + 0.1

    return dict(
        w1=w1, b1=b1, g1=g1, be1=be1, rm1=rm1, rv1=rv1,
        w2=w2, b2=b2, g2=g2, be2=be2, rm2=rm2, rv2=rv2,
        w3=w3, b3=b3,
    )


def reference_forward(x, p):
    """Plain-JAX f32 reference of the eval-mode forward (unfolded BN)."""
    h = jnp.maximum(x @ p["w1"] + p["b1"], 0.0)
    h = (h - p["rm1"]) / jnp.sqrt(p["rv1"] + BN_EPS) * p["g1"] + p["be1"]
    h = jnp.maximum(h @ p["w2"] + p["b2"], 0.0)
    h = (h - p["rm2"]) / jnp.sqrt(p["rv2"] + BN_EPS) * p["g2"] + p["be2"]
    return (h @ p["w3"] + p["b3"])[:, 0]


def reference_forward_matched(x, p, compute_dtype=jnp.bfloat16):
    """Reference applying the same BN folding + bf16 casts as the kernel
    (differs from it only in matmul accumulation order)."""
    cdt = compute_dtype
    w2f, b2f = _fold_bn_into_next_linear(p["g1"], p["be1"], p["rm1"], p["rv1"],
                                         p["w2"], p["b2"])
    w3f, b3f = _fold_bn_into_next_linear(p["g2"], p["be2"], p["rm2"], p["rv2"],
                                         p["w3"], p["b3"])
    h = jnp.dot(x.astype(cdt), p["w1"].astype(cdt),
                preferred_element_type=jnp.float32)
    h = jnp.maximum(h + p["b1"], 0.0)
    h = jnp.dot(h.astype(cdt), w2f.astype(cdt),
                preferred_element_type=jnp.float32)
    h = jnp.maximum(h + b2f, 0.0)
    out = jnp.dot(h.astype(cdt), w3f.astype(cdt),
                  preferred_element_type=jnp.float32)
    return out[:, 0] + b3f[0, 0]


# --------------------------------------------------------------------------
# Demo / self-test
# --------------------------------------------------------------------------
if __name__ == "__main__":
    B, D, H = 64, 16, 32   # small shapes consistent with the module; grid = 2
    key = jax.random.PRNGKey(0)
    kx, kp = jax.random.split(key)

    x = jax.random.normal(kx, (B, D), jnp.float32)
    params = init_params(kp, D, H)

    # TODO(synk): training-mode Dropout / batch-stat BatchNorm not implemented
    # (forward matches model.eval() inference semantics).
    out = mlp_classifier_forward(x, params)
    jax.block_until_ready(out)
    assert out.shape == (B,), out.shape

    # Tight check vs a quantization-matched reference (same bf16 casts / BN
    # folding as the kernel; only accumulation order differs).
    ref_q = reference_forward_matched(x, params)
    assert jnp.allclose(out, ref_q, atol=1e-4, rtol=1e-4), (
        "max |diff| vs matched ref:", float(jnp.max(jnp.abs(out - ref_q))))

    # Loose check vs the pure-f32 eval-mode reference (bf16 streaming of x and
    # the weight matrices introduces small numerical differences).
    ref = reference_forward(x, params)
    assert jnp.allclose(out, ref, atol=5e-2, rtol=5e-2), (
        "max |diff| vs f32 ref:", float(jnp.max(jnp.abs(out - ref))))

    print("KERNEL_OK")
</pallas_src>

<mosaic_0001>
module attributes {stable_mosaic.version = 11 : i64} {
  func.func @mlp_kernel(%arg0: i32, %arg1: memref<32x16xbf16, #tpu.memory_space<vmem>>, %arg2: memref<16x32xbf16, #tpu.memory_space<vmem>>, %arg3: memref<1x32xf32, #tpu.memory_space<vmem>>, %arg4: memref<32x32xbf16, #tpu.memory_space<vmem>>, %arg5: memref<1x32xf32, #tpu.memory_space<vmem>>, %arg6: memref<1x32xbf16, #tpu.memory_space<vmem>>, %arg7: memref<1x1x32xf32, #tpu.memory_space<vmem>>) attributes {dimension_semantics = [#tpu.dimension_semantics<parallel>], iteration_bounds = array<i64: 2>, scalar_prefetch = 0 : i64, scratch_operands = 0 : i64, tpu.core_type = #tpu.core_type<tc>, window_params = [{transform_indices = @transform_0, window_bounds = array<i64: 32, 16>}, {pipeline_mode = #tpu.pipeline_mode<synchronous>, transform_indices = @transform_1, window_bounds = array<i64: 16, 32>}, {pipeline_mode = #tpu.pipeline_mode<synchronous>, transform_indices = @transform_2, window_bounds = array<i64: 1, 32>}, {pipeline_mode = #tpu.pipeline_mode<synchronous>, transform_indices = @transform_3, window_bounds = array<i64: 32, 32>}, {pipeline_mode = #tpu.pipeline_mode<synchronous>, transform_indices = @transform_4, window_bounds = array<i64: 1, 32>}, {pipeline_mode = #tpu.pipeline_mode<synchronous>, transform_indices = @transform_5, window_bounds = array<i64: 1, 32>}, {transform_indices = @transform_6, window_bounds = array<i64: 1, 1, 32>}]} {
    %c0 = arith.constant 0 : index
    %c0_0 = arith.constant 0 : index
    %0 = vector.load %arg1[%c0, %c0_0] : memref<32x16xbf16, #tpu.memory_space<vmem>>, vector<32x16xbf16>
    %c0_1 = arith.constant 0 : index
    %c0_2 = arith.constant 0 : index
    %1 = vector.load %arg2[%c0_1, %c0_2] : memref<16x32xbf16, #tpu.memory_space<vmem>>, vector<16x32xbf16>
    %cst = arith.constant dense<0.000000e+00> : vector<32x32xf32>
    %2 = tpu.matmul %0, %1, %cst {dimension_numbers = #tpu.dot_dimension_numbers<[1], [0], [0], [1], [0, 0, 1, 1], [], []>} : vector<32x16xbf16>, vector<16x32xbf16>, vector<32x32xf32> -> vector<32x32xf32>
    %c0_3 = arith.constant 0 : index
    %c0_4 = arith.constant 0 : index
    %3 = vector.load %arg3[%c0_3, %c0_4] : memref<1x32xf32, #tpu.memory_space<vmem>>, vector<1x32xf32>
    %4 = vector.broadcast %3 : vector<1x32xf32> to vector<32x32xf32>
    %5 = arith.addf %2, %4 : vector<32x32xf32>
    %cst_5 = arith.constant 0.000000e+00 : f32
    %6 = vector.broadcast %cst_5 : f32 to vector<32x32xf32>
    %7 = arith.maximumf %5, %6 : vector<32x32xf32>
    %8 = arith.truncf %7 : vector<32x32xf32> to vector<32x32xbf16>
    %c0_6 = arith.constant 0 : index
    %c0_7 = arith.constant 0 : index
    %9 = vector.load %arg4[%c0_6, %c0_7] : memref<32x32xbf16, #tpu.memory_space<vmem>>, vector<32x32xbf16>
    %cst_8 = arith.constant dense<0.000000e+00> : vector<32x32xf32>
    %10 = tpu.matmul %8, %9, %cst_8 {dimension_numbers = #tpu.dot_dimension_numbers<[1], [0], [0], [1], [0, 0, 1, 1], [], []>} : vector<32x32xbf16>, vector<32x32xbf16>, vector<32x32xf32> -> vector<32x32xf32>
    %c0_9 = arith.constant 0 : index
    %c0_10 = arith.constant 0 : index
    %11 = vector.load %arg5[%c0_9, %c0_10] : memref<1x32xf32, #tpu.memory_space<vmem>>, vector<1x32xf32>
    %12 = vector.broadcast %11 : vector<1x32xf32> to vector<32x32xf32>
    %13 = arith.addf %10, %12 : vector<32x32xf32>
    %cst_11 = arith.constant 0.000000e+00 : f32
    %14 = vector.broadcast %cst_11 : f32 to vector<32x32xf32>
    %15 = arith.maximumf %13, %14 : vector<32x32xf32>
    %c0_12 = arith.constant 0 : index
    %c0_13 = arith.constant 0 : index
    %16 = vector.load %arg6[%c0_12, %c0_13] : memref<1x32xbf16, #tpu.memory_space<vmem>>, vector<1x32xbf16>
    %17 = arith.truncf %15 : vector<32x32xf32> to vector<32x32xbf16>
    %cst_14 = arith.constant dense<0.000000e+00> : vector<1x32xf32>
    %18 = tpu.matmul %16, %17, %cst_14 {dimension_numbers = #tpu.dot_dimension_numbers<[1], [1], [0], [0], [0, 0, 1, 0], [], []>} : vector<1x32xbf16>, vector<32x32xbf16>, vector<1x32xf32> -> vector<1x32xf32>
    %19 = vector.shape_cast %18 : vector<1x32xf32> to vector<1x1x32xf32>
    %c0_15 = arith.constant 0 : index
    %c0_16 = arith.constant 0 : index
    %c0_17 = arith.constant 0 : index
    %20 = vector.load %arg7[%c0_15, %c0_16, %c0_17] : memref<1x1x32xf32, #tpu.memory_space<vmem>>, vector<1x1x32xf32>
    tpu.vector_store %arg7[%c0_15, %c0_16, %c0_17], %19 {strides = array<i32>} : memref<1x1x32xf32, #tpu.memory_space<vmem>>, vector<1x1x32xf32>,
    return
  }
  func.func @transform_0(%arg0: i32) -> (i32, i32) {
    %c0_i32 = arith.constant 0 : i32
    %c0_i32_0 = arith.constant 0 : i32
    return %arg0, %c0_i32 : i32, i32
  }
  func.func @transform_1(%arg0: i32) -> (i32, i32) {
    %c0_i32 = arith.constant 0 : i32
    %c0_i32_0 = arith.constant 0 : i32
    %c0_i32_1 = arith.constant 0 : i32
    return %c0_i32, %c0_i32_0 : i32, i32
  }
  func.func @transform_2(%arg0: i32) -> (i32, i32) {
    %c0_i32 = arith.constant 0 : i32
    %c0_i32_0 = arith.constant 0 : i32
    %c0_i32_1 = arith.constant 0 : i32
    return %c0_i32, %c0_i32_0 : i32, i32
  }
  func.func @transform_3(%arg0: i32) -> (i32, i32) {
    %c0_i32 = arith.constant 0 : i32
    %c0_i32_0 = arith.constant 0 : i32
    %c0_i32_1 = arith.constant 0 : i32
    return %c0_i32, %c0_i32_0 : i32, i32
  }
  func.func @transform_4(%arg0: i32) -> (i32, i32) {
    %c0_i32 = arith.constant 0 : i32
    %c0_i32_0 = arith.constant 0 : i32
    %c0_i32_1 = arith.constant 0 : i32
    return %c0_i32, %c0_i32_0 : i32, i32
  }
  func.func @transform_5(%arg0: i32) -> (i32, i32) {
    %c0_i32 = arith.constant 0 : i32
    %c0_i32_0 = arith.constant 0 : i32
    %c0_i32_1 = arith.constant 0 : i32
    return %c0_i32, %c0_i32_0 : i32, i32
  }
  func.func @transform_6(%arg0: i32) -> (i32, i32, i32) {
    %c0_i32 = arith.constant 0 : i32
    %c0_i32_0 = arith.constant 0 : i32
    %c0_i32_1 = arith.constant 0 : i32
    return %arg0, %c0_i32, %c0_i32_0 : i32, i32, i32
  }
}

</mosaic_0001>

<bundles_post_ra>
// kernel: mlp_classifier_forward.1
= control target key start
LH: loop header
LB: loop body
LE: loop exit
PB: predicated region body
PF: predicated region fallthrough
CT: control target
= control target key end

     0   :  { %s527_s21 = smov 0   ;;  %s572_s0 = inlined_call_operand.vmem [shape: bf16[64,16], index: 0, kind: input, shape index: {}]   ;;  %s573_s1 = inlined_call_operand.vmem [shape: bf16[16,32], index: 1, kind: input, shape index: {}]   ;;  %s574_s2 = inlined_call_operand.vmem [shape: f32[1,32], index: 2, kind: input, shape index: {}]   ;;  %s575_s3 = inlined_call_operand.vmem [shape: bf16[32,32], index: 3, kind: input, shape index: {}]   ;;  %s576_s4 = inlined_call_operand.vmem [shape: f32[1,32], index: 4, kind: input, shape index: {}]   ;;  %s577_s5 = inlined_call_operand.vmem [shape: bf16[1,32], index: 5, kind: input, shape index: {}]   ;;  %s578_s6 = inlined_call_operand.vmem [shape: f32[2,1,32], index: 6, kind: output, shape index: {}]  }
   0x1 LB: > { %s533_s22 = sadd.s32 4294967295, %s490_s21   ;;  %p437_p0 = scmp.ge.s32.totalorder %s490_s21, 1  ;;  %s490_s21 = sphi %s527_s21, %s16_s21  }
   0x2   : > { %p213_p1 = scmp.lt.s32.totalorder %s490_s21, 3 }
   0x4   : > { %p214_p2 = pnand %p437_p0, %p213_p1 }
   0x5   : > { %s438_s25 = sshll.u32 (!%p214_p2), %s533_s22, 2  ;;  %p247_p4 = scmp.lt.s32.totalorder (!%p214_p2), %s533_s22, 1 }
   0x6   : > { %217 = sbr.rel (%p214_p2) target bundleno = 473 (0x1d9), region = 44  ;;  %p242_p3 = scmp.lt.s32.totalorder (!%p214_p2), %s438_s25, 7 }
   0xb   : > { %v469_v0 = vld [vmem:[%s573_s1] sm:$0xff]  ;;  %s580_s25 = smov (!%p242_p3, %s438_s25), 7  ;;  %vm277_vm0 = vcmask 130048   ;;  %v471_v3 = vld [vmem:[%s575_s3 + $0x8] sm:$0xff]  ;;  %vm329_vm1 = vcmask 261120   ;;  %s582_s22 = smov (!%p247_p4, %s533_s22), 1 }
   0xc   : > { %291 = vmatpush.bf16.msra.mxu0 %v469_v0  ;;  %s439_s26 = sshll.u32 %s580_s25, 2  ;;  %342 = vmatpush.bf16.msra.mxu1 %v471_v3  ;;  %v470_v4 = vld [vmem:[%s575_s3] sm:$0xff]  ;;  %s249_s18 = scalar_lea.vmem %s578_s6, %s582_s22  ;;  %vm384_vm2 = vcmask 253952  }
   0xd   : > { %s245_s29 = scalar_lea.vmem %s572_s0, %s439_s26  ;;  %472 = vmatpush.bf16.msra.mxu3 %v471_v3  ;;  %v482_v6 = vld [vmem:[%s574_s2] ss:$0 sm:$0xff] }
   0xe   : > { %v467_v1 = vld [vmem:[%s245_s29] sm:$0xff]  ;;  %v468_v2 = vld [vmem:[%s245_s29 + $0x8] sm:$0xff] }
   0xf   : > { %452 = vmatmul.msk.bf16.vlgmr.msra.gmra.mxu0 %vm277_vm0, %v467_v1  ;;  %v483_v22 = vld [vmem:[%s576_s4] ss:$0 sm:$0xff] }
  0x10   : > { %343 = vmatpush.bf16.msra.mxu1 %v470_v4  ;;  %v359_v37 = vld [vmem:[%s577_s5] sm:$0x1] }
  0x11   : > { %473 = vmatpush.bf16.msra.mxu3 %v470_v4 }
  0x1f   : > { %453 = vmatmul.msk.bf16.gmra.mxu0 %vm277_vm0, %v468_v2 }
  0x8c   : > { %v293_v5 = vpop.f32.mrf.mxu0 }
  0x8d   : > { %v294_v7 = vadd.f32 %v482_v6, %v293_v5 }
  0x8f   : > { %v303_v10 = vmax.f32 %v294_v7, 0.0 }
  0x94   : > { %v295_v8 = vpop.f32.mrf.mxu0 }
  0x95   : > { %v296_v9 = vadd.f32 %v482_v6, %v295_v8 }
  0x97   : > { %v304_v11 = vmax.f32 %v296_v9, 0.0 }
  0x99   : > { %v307_v12 = vpack.c.bf16 %v304_v11, %v303_v10 }
  0x9b   : > { %462 = vmatmul.msk.bf16.vlgmr.msra.gmra.mxu1 %vm329_vm1, %v307_v12 }
  0x9c   : > { %v298_v13 = vpop.f32.mrf.mxu0 }
  0x9d   : > { %v299_v14 = vadd.f32 %v482_v6, %v298_v13 }
  0x9f   : > { %v305_v17 = vmax.f32 %v299_v14, 0.0 }
  0xa4   : > { %v300_v15 = vpop.f32.mrf.mxu0 }
  0xa5   : > { %v301_v16 = vadd.f32 %v482_v6, %v300_v15 }
  0xa7   : > { %v306_v18 = vmax.f32 %v301_v16, 0.0 }
  0xa9   : > { %v308_v19 = vpack.c.bf16 %v306_v18, %v305_v17 }
  0xab   : > { %463 = vmatmul.msk.bf16.vlgmr.msra.gmra.mxu3 %vm329_vm1, %v308_v19 }
 0x118   : > { %v345_v20 = vpop.f32.mrf.mxu1 }
 0x119   : > { %v346_v30 = vadd.f32 %v483_v22, %v345_v20 }
 0x11b   : > { %v355_v34 = vmax.f32 %v346_v30, 0.0 }
 0x120   : > { %v347_v24 = vpop.f32.mrf.mxu1 }
 0x121   : > { %v348_v27 = vadd.f32 %v483_v22, %v347_v24 }
 0x123   : > { %v356_v32 = vmax.f32 %v348_v27, 0.0 }
 0x125   : > { %v360_v35 = vpack.c.bf16 %v356_v32, %v355_v34 }
 0x127   : > { %v366_v36 = vsel %vm329_vm1, %v360_v35, 0 }
 0x12e   : > { %v350_v21 = vpop.f32.mrf.mxu3 }
 0x12f   : > { %v351_v23 = vadd.f32 %v483_v22, %v350_v21 }
 0x131   : > { %v357_v28 = vmax.f32 %v351_v23, 0.0 }
 0x136   : > { %v352_v25 = vpop.f32.mrf.mxu3 }
 0x137   : > { %v353_v26 = vadd.f32 %v483_v22, %v352_v25 }
 0x139   : > { %v358_v29 = vmax.f32 %v353_v26, 0.0 }
 0x13b   : > { %v361_v31 = vpack.c.bf16 %v358_v29, %v357_v28 }
 0x13d   : > { %v369_v33 = vsel %vm329_vm1, %v361_v31, 0 }
 0x13e   : > { %377 = vmatpush.bf16.xpose.msra.mxu2 %v369_v33 }
 0x146   : > { %378 = vmatpush.bf16.xpose.msra.mxu2 %v366_v36 }
 0x14d   : > { %464 = vmatmul.msk.bf16.vlgmr.msra.gmra.mxu2 %vm329_vm1, %v359_v37 }
 0x1d0   : > { %v380_v38 = vpop.f32.mrf.mxu2 }
 0x1d1   : > { %385 = vst.msk [vmem:[%s249_s18] sm:$0x1] %vm384_vm2, %v380_v38 }
 0x1d8   : > { %v382_v39 = vpop.f32.mrf.mxu2 }
 0x1d9 PF: > { %s16_s21 = sadd.s32 1, %s490_s21  }
 0x1da   : > { %p13_p5 = scmp.ge.s32.totalorder %s16_s21, 4  }
 0x1dc   :  { %15 = sbr.rel (!%p13_p5) target bundleno = 1 (0x1), region = 74 }

</bundles_post_ra>
